<compile_context>
chip_gen: v6e
topology: v6e:2x2x1
jax: 0.10.0
libtpu: 0.0.40
codegen_flags: <defaults>
</compile_context>

<pallas_src>
import jax
import jax.numpy as jnp
from jax import lax
from jax.experimental import pallas as pl
from jax.experimental.pallas import tpu as pltpu


def controller_rollout_kernel(x_ref, gconst_ref, wg_ref, wo_ref, hc0_ref,
                              out_ref, hc_ref,
                              gx_ref, h_all_ref):
    """Single-grid-point kernel: runs all L RecurrentController.forward() calls."""
    D_in = x_ref.shape[-1]
    Bp = gconst_ref.shape[0]
    H = hc0_ref.shape[-1]
    LB = x_ref.shape[0]
    L = LB // Bp

    # Packed gate-weight slab rows: [ W_x_fused (D_in rows) | W_hh^T (H rows) ]  (sublane-aligned)
    w_x = wg_ref[0:D_in, :]                    # (D_in, 4H)  input Linear folded into W_ih
    w_h = wg_ref[D_in:D_in + H, :]             # (H, 4H)

    # ---- (1) Hoisted input projection: one MXU call for all L steps -----------------------
    gx_ref[...] = jnp.dot(x_ref[...], w_x, preferred_element_type=jnp.float32)   # (L*Bp, 4H)

    # Loop-invariant control/bias term (u * w_u_row + b_in@W_x^T + b_ih + b_hh), precomputed.
    gconst = gconst_ref[...]                   # (Bp, 4H)

    # ---- (2) Serial LSTM recurrence (unrolled) --------------------------------------------
    def step(t, carry):
        h, c = carry
        r = pl.multiple_of(t * Bp, Bp)
        gates = (gx_ref[pl.ds(r, Bp), :] + gconst
                 + jnp.dot(h, w_h, preferred_element_type=jnp.float32))
        # PyTorch LSTMCell gate order: input, forget, cell, output
        i_g = jax.nn.sigmoid(gates[:, 0 * H:1 * H])
        f_g = jax.nn.sigmoid(gates[:, 1 * H:2 * H])
        g_g = jnp.tanh(gates[:, 2 * H:3 * H])
        o_g = jax.nn.sigmoid(gates[:, 3 * H:4 * H])
        c_new = f_g * c + i_g * g_g
        h_new = o_g * jnp.tanh(c_new)
        h_all_ref[pl.ds(r, Bp), :] = h_new
        return h_new, c_new

    h_fin, c_fin = lax.fori_loop(0, L, step, (hc0_ref[0], hc0_ref[1]), unroll=True)

    hc_ref[0] = h_fin
    hc_ref[1] = c_fin

    # ---- (3) Batched output head: one matmul + one store ----------------------------------
    w_o = wo_ref[0:H, :]                       # (H, K)
    b_o = wo_ref[H:H + 1, :]                   # (1, K)
    out_ref[...] = jnp.dot(h_all_ref[...], w_o,
                           preferred_element_type=jnp.float32) + b_o


def recurrent_controller_rollout(x_seq, u, h0, c0,
                                 w_in, b_in, w_ih, w_hh, b_ih, b_hh,
                                 w_out, b_out):
    """Run L forward() calls of RecurrentController in one kernel.

    x_seq: (L, B, D_in) per-layer features, u: (B, 1) control, PyTorch-layout params.
    Returns (out_seq (L,B,K), h_final (B,H), c_final (B,H)).
    """
    L, B, D_in = x_seq.shape
    H = h0.shape[1]
    K = w_out.shape[0]
    Bp = max(8, ((B + 7) // 8) * 8)            # pad batch to a sublane multiple

    # ---- one-time parameter folding / packing (wrapper, not per-step) ---------------------
    # NOTE: folding the input Linear reassociates f32 arithmetic vs. PyTorch (not bit-exact,
    # ~1e-5 relative at these scales).
    w_u_row = w_ih[:, :1].T                    # (1, 4H)   W_ih column for the control signal u
    w_x_t = w_ih[:, 1:].T                      # (F, 4H)
    w_x_fused = w_in.T @ w_x_t                 # (D_in, 4H) fold input Linear into W_ih
    b_fold = b_in @ w_x_t + (b_ih + b_hh).reshape(1, 4 * H)   # (1, 4H)

    # Batch padding (zero rows; sliced off after the call).
    pad_b = Bp - B
    x_p = jnp.pad(x_seq, ((0, 0), (0, pad_b), (0, 0)))
    u_p = jnp.pad(u, ((0, pad_b), (0, 0)))

    gconst = u_p * w_u_row + b_fold                                       # (Bp, 4H)
    wg_slab = jnp.concatenate([w_x_fused, w_hh.T], axis=0)                # (D_in+H, 4H)
    wo_slab = jnp.concatenate([w_out.T, b_out], axis=0)                   # (H+1, K)
    hc0 = jnp.stack([jnp.tile(h0, (Bp, 1)), jnp.tile(c0, (Bp, 1))], axis=0)   # (2, Bp, H)
    x_flat = x_p.reshape(L * Bp, D_in)                                    # lane/sublane-dense slab

    vmem = pl.BlockSpec(memory_space=pltpu.MemorySpace.VMEM)

    out_flat, hc = pl.pallas_call(
        controller_rollout_kernel,
        out_shape=(jax.ShapeDtypeStruct((L * Bp, K), jnp.float32),
                   jax.ShapeDtypeStruct((2, Bp, H), jnp.float32)),
        in_specs=[vmem, vmem, vmem, vmem, vmem],
        out_specs=(vmem, vmem),
        scratch_shapes=[
            pltpu.VMEM((L * Bp, 4 * H), jnp.float32),    # gates_x for all steps
            pltpu.VMEM((L * Bp, H), jnp.float32),        # all h' for the batched head
        ],
    )(x_flat, gconst, wg_slab, wo_slab, hc0)

    out_seq = out_flat.reshape(L, Bp, K)[:, :B, :]
    return out_seq, hc[0, :B], hc[1, :B]


def reference_rollout(x_seq, u, h0, c0,
                      w_in, b_in, w_ih, w_hh, b_ih, b_hh, w_out, b_out):
    """Pure-JAX, unfused reference matching the PyTorch module step-by-step."""
    L, B, _ = x_seq.shape
    H = h0.shape[1]
    h = jnp.tile(h0, (B, 1))
    c = jnp.tile(c0, (B, 1))
    outs = []
    for t in range(L):
        feat = x_seq[t] @ w_in.T + b_in
        xc = jnp.concatenate([u, feat], axis=1)
        gates = xc @ w_ih.T + b_ih + h @ w_hh.T + b_hh
        i_g = jax.nn.sigmoid(gates[:, 0 * H:1 * H])
        f_g = jax.nn.sigmoid(gates[:, 1 * H:2 * H])
        g_g = jnp.tanh(gates[:, 2 * H:3 * H])
        o_g = jax.nn.sigmoid(gates[:, 3 * H:4 * H])
        c = f_g * c + i_g * g_g
        h = o_g * jnp.tanh(c)
        outs.append(h @ w_out.T + b_out)
    return jnp.stack(outs, axis=0), h, c


if __name__ == "__main__":
    L, B, D_in, F, H, K = 8, 4, 16, 16, 32, 4

    key = jax.random.PRNGKey(0)
    ks = jax.random.split(key, 13)

    # Activations / control signal
    x_seq = jax.random.normal(ks[0], (L, B, D_in), dtype=jnp.float32)
    u = jax.random.uniform(ks[1], (B, 1), dtype=jnp.float32)          # control in [0, 1]

    # Parameters (deterministic synthetic init, PyTorch-like scales / layouts)
    s_in = 1.0 / jnp.sqrt(D_in)
    s_rc = 1.0 / jnp.sqrt(H)
    w_in = jax.random.uniform(ks[2], (F, D_in), minval=-s_in, maxval=s_in)       # Linear weight (out, in)
    b_in = jax.random.uniform(ks[3], (1, F), minval=-s_in, maxval=s_in)
    w_ih = jax.random.uniform(ks[4], (4 * H, 1 + F), minval=-s_rc, maxval=s_rc)  # LSTMCell W_ih
    w_hh = jax.random.uniform(ks[5], (4 * H, H), minval=-s_rc, maxval=s_rc)      # LSTMCell W_hh
    b_ih = jax.random.uniform(ks[6], (4 * H,), minval=-s_rc, maxval=s_rc)
    b_hh = jax.random.uniform(ks[7], (4 * H,), minval=-s_rc, maxval=s_rc)
    w_out = jax.random.uniform(ks[8], (K, H), minval=-s_rc, maxval=s_rc)
    b_out = jax.random.uniform(ks[9], (1, K), minval=-s_rc, maxval=s_rc)
    h0 = jax.random.normal(ks[10], (1, H), dtype=jnp.float32)
    c0 = jax.random.normal(ks[11], (1, H), dtype=jnp.float32)

    args = (x_seq, u, h0, c0, w_in, b_in, w_ih, w_hh, b_ih, b_hh, w_out, b_out)

    out_seq, h_new, c_new = recurrent_controller_rollout(*args)
    jax.block_until_ready((out_seq, h_new, c_new))

    out_ref, h_ref, c_ref = reference_rollout(*args)
    assert jnp.allclose(out_seq, out_ref, atol=1e-4, rtol=1e-4)
    assert jnp.allclose(h_new, h_ref, atol=1e-4, rtol=1e-4)
    assert jnp.allclose(c_new, c_ref, atol=1e-4, rtol=1e-4)

    print("KERNEL_OK")
</pallas_src>

<mosaic_0001>
module attributes {stable_mosaic.version = 11 : i64} {
  func.func @controller_rollout_kernel(%arg0: memref<64x16xf32, #tpu.memory_space<vmem>>, %arg1: memref<8x128xf32, #tpu.memory_space<vmem>>, %arg2: memref<48x128xf32, #tpu.memory_space<vmem>>, %arg3: memref<33x4xf32, #tpu.memory_space<vmem>>, %arg4: memref<2x8x32xf32, #tpu.memory_space<vmem>>, %arg5: memref<64x4xf32, #tpu.memory_space<vmem>>, %arg6: memref<2x8x32xf32, #tpu.memory_space<vmem>>, %arg7: memref<64x128xf32, #tpu.memory_space<vmem>>, %arg8: memref<64x32xf32, #tpu.memory_space<vmem>>) attributes {dimension_semantics = [], scalar_prefetch = 0 : i64, scratch_operands = 2 : i64, tpu.core_type = #tpu.core_type<tc>} {
    %c0 = arith.constant 0 : index
    %c0_0 = arith.constant 0 : index
    %0 = vector.load %arg2[%c0, %c0_0] : memref<48x128xf32, #tpu.memory_space<vmem>>, vector<16x128xf32>
    %c16 = arith.constant 16 : index
    %c0_1 = arith.constant 0 : index
    %1 = vector.load %arg2[%c16, %c0_1] : memref<48x128xf32, #tpu.memory_space<vmem>>, vector<32x128xf32>
    %c0_2 = arith.constant 0 : index
    %c0_3 = arith.constant 0 : index
    %2 = vector.load %arg0[%c0_2, %c0_3] : memref<64x16xf32, #tpu.memory_space<vmem>>, vector<64x16xf32>
    %cst = arith.constant dense<0.000000e+00> : vector<64x128xf32>
    %3 = tpu.matmul %2, %0, %cst {dimension_numbers = #tpu.dot_dimension_numbers<[1], [0], [0], [1], [0, 0, 1, 1], [], []>} : vector<64x16xf32>, vector<16x128xf32>, vector<64x128xf32> -> vector<64x128xf32>
    %c0_4 = arith.constant 0 : index
    %c0_5 = arith.constant 0 : index
    %4 = vector.load %arg7[%c0_4, %c0_5] : memref<64x128xf32, #tpu.memory_space<vmem>>, vector<64x128xf32>
    tpu.vector_store %arg7[%c0_4, %c0_5], %3 {strides = array<i32>} : memref<64x128xf32, #tpu.memory_space<vmem>>, vector<64x128xf32>,
    %c0_6 = arith.constant 0 : index
    %c0_7 = arith.constant 0 : index
    %5 = vector.load %arg1[%c0_6, %c0_7] : memref<8x128xf32, #tpu.memory_space<vmem>>, vector<8x128xf32>
    %c0_8 = arith.constant 0 : index
    %c0_9 = arith.constant 0 : index
    %c0_10 = arith.constant 0 : index
    %6 = vector.load %arg4[%c0_8, %c0_9, %c0_10] : memref<2x8x32xf32, #tpu.memory_space<vmem>>, vector<1x8x32xf32>
    %7 = vector.shape_cast %6 : vector<1x8x32xf32> to vector<8x32xf32>
    %c1 = arith.constant 1 : index
    %c0_11 = arith.constant 0 : index
    %c0_12 = arith.constant 0 : index
    %8 = vector.load %arg4[%c1, %c0_11, %c0_12] : memref<2x8x32xf32, #tpu.memory_space<vmem>>, vector<1x8x32xf32>
    %9 = vector.shape_cast %8 : vector<1x8x32xf32> to vector<8x32xf32>
    %c0_i32 = arith.constant 0 : i32
    %c8_i32 = arith.constant 8 : i32
    %10 = arith.muli %c0_i32, %c8_i32 : i32
    %11 = tpu.assume_multiple %10, 8 : i32
    %12 = arith.index_cast %11 : i32 to index
    %c0_13 = arith.constant 0 : index
    %13 = vector.load %arg7[%12, %c0_13] : memref<64x128xf32, #tpu.memory_space<vmem>>, vector<8x128xf32>
    %14 = arith.addf %13, %5 : vector<8x128xf32>
    %cst_14 = arith.constant dense<0.000000e+00> : vector<8x128xf32>
    %15 = tpu.matmul %7, %1, %cst_14 {dimension_numbers = #tpu.dot_dimension_numbers<[1], [0], [0], [1], [0, 0, 1, 1], [], []>} : vector<8x32xf32>, vector<32x128xf32>, vector<8x128xf32> -> vector<8x128xf32>
    %16 = arith.addf %14, %15 : vector<8x128xf32>
    %17 = vector.extract_strided_slice %16 {offsets = [0, 0], sizes = [8, 32], strides = [1, 1]} : vector<8x128xf32> to vector<8x32xf32>
    %18 = arith.negf %17 : vector<8x32xf32>
    %19 = math.exp %18 : vector<8x32xf32>
    %cst_15 = arith.constant 1.000000e+00 : f32
    %20 = vector.broadcast %cst_15 : f32 to vector<8x32xf32>
    %21 = arith.addf %20, %19 : vector<8x32xf32>
    %22 = arith.divf %20, %21 : vector<8x32xf32>
    %23 = vector.extract_strided_slice %16 {offsets = [0, 32], sizes = [8, 32], strides = [1, 1]} : vector<8x128xf32> to vector<8x32xf32>
    %24 = arith.negf %23 : vector<8x32xf32>
    %25 = math.exp %24 : vector<8x32xf32>
    %cst_16 = arith.constant 1.000000e+00 : f32
    %26 = vector.broadcast %cst_16 : f32 to vector<8x32xf32>
    %27 = arith.addf %26, %25 : vector<8x32xf32>
    %28 = arith.divf %26, %27 : vector<8x32xf32>
    %29 = vector.extract_strided_slice %16 {offsets = [0, 64], sizes = [8, 32], strides = [1, 1]} : vector<8x128xf32> to vector<8x32xf32>
    %30 = math.tanh %29 : vector<8x32xf32>
    %31 = vector.extract_strided_slice %16 {offsets = [0, 96], sizes = [8, 32], strides = [1, 1]} : vector<8x128xf32> to vector<8x32xf32>
    %32 = arith.negf %31 : vector<8x32xf32>
    %33 = math.exp %32 : vector<8x32xf32>
    %cst_17 = arith.constant 1.000000e+00 : f32
    %34 = vector.broadcast %cst_17 : f32 to vector<8x32xf32>
    %35 = arith.addf %34, %33 : vector<8x32xf32>
    %36 = arith.divf %34, %35 : vector<8x32xf32>
    %37 = arith.mulf %28, %9 : vector<8x32xf32>
    %38 = arith.mulf %22, %30 : vector<8x32xf32>
    %39 = arith.addf %37, %38 : vector<8x32xf32>
    %40 = math.tanh %39 : vector<8x32xf32>
    %41 = arith.mulf %36, %40 : vector<8x32xf32>
    %42 = arith.index_cast %11 : i32 to index
    %c0_18 = arith.constant 0 : index
    %43 = vector.load %arg8[%42, %c0_18] : memref<64x32xf32, #tpu.memory_space<vmem>>, vector<8x32xf32>
    tpu.vector_store %arg8[%42, %c0_18], %41 {strides = array<i32>} : memref<64x32xf32, #tpu.memory_space<vmem>>, vector<8x32xf32>,
    %c1_i32 = arith.constant 1 : i32
    %c8_i32_19 = arith.constant 8 : i32
    %44 = arith.muli %c1_i32, %c8_i32_19 : i32
    %45 = tpu.assume_multiple %44, 8 : i32
    %46 = arith.index_cast %45 : i32 to index
    %c0_20 = arith.constant 0 : index
    %47 = vector.load %arg7[%46, %c0_20] : memref<64x128xf32, #tpu.memory_space<vmem>>, vector<8x128xf32>
    %48 = arith.addf %47, %5 : vector<8x128xf32>
    %cst_21 = arith.constant dense<0.000000e+00> : vector<8x128xf32>
    %49 = tpu.matmul %41, %1, %cst_21 {dimension_numbers = #tpu.dot_dimension_numbers<[1], [0], [0], [1], [0, 0, 1, 1], [], []>} : vector<8x32xf32>, vector<32x128xf32>, vector<8x128xf32> -> vector<8x128xf32>
    %50 = arith.addf %48, %49 : vector<8x128xf32>
    %51 = vector.extract_strided_slice %50 {offsets = [0, 0], sizes = [8, 32], strides = [1, 1]} : vector<8x128xf32> to vector<8x32xf32>
    %52 = arith.negf %51 : vector<8x32xf32>
    %53 = math.exp %52 : vector<8x32xf32>
    %cst_22 = arith.constant 1.000000e+00 : f32
    %54 = vector.broadcast %cst_22 : f32 to vector<8x32xf32>
    %55 = arith.addf %54, %53 : vector<8x32xf32>
    %56 = arith.divf %54, %55 : vector<8x32xf32>
    %57 = vector.extract_strided_slice %50 {offsets = [0, 32], sizes = [8, 32], strides = [1, 1]} : vector<8x128xf32> to vector<8x32xf32>
    %58 = arith.negf %57 : vector<8x32xf32>
    %59 = math.exp %58 : vector<8x32xf32>
    %cst_23 = arith.constant 1.000000e+00 : f32
    %60 = vector.broadcast %cst_23 : f32 to vector<8x32xf32>
    %61 = arith.addf %60, %59 : vector<8x32xf32>
    %62 = arith.divf %60, %61 : vector<8x32xf32>
    %63 = vector.extract_strided_slice %50 {offsets = [0, 64], sizes = [8, 32], strides = [1, 1]} : vector<8x128xf32> to vector<8x32xf32>
    %64 = math.tanh %63 : vector<8x32xf32>
    %65 = vector.extract_strided_slice %50 {offsets = [0, 96], sizes = [8, 32], strides = [1, 1]} : vector<8x128xf32> to vector<8x32xf32>
    %66 = arith.negf %65 : vector<8x32xf32>
    %67 = math.exp %66 : vector<8x32xf32>
    %cst_24 = arith.constant 1.000000e+00 : f32
    %68 = vector.broadcast %cst_24 : f32 to vector<8x32xf32>
    %69 = arith.addf %68, %67 : vector<8x32xf32>
    %70 = arith.divf %68, %69 : vector<8x32xf32>
    %71 = arith.mulf %62, %39 : vector<8x32xf32>
    %72 = arith.mulf %56, %64 : vector<8x32xf32>
    %73 = arith.addf %71, %72 : vector<8x32xf32>
    %74 = math.tanh %73 : vector<8x32xf32>
    %75 = arith.mulf %70, %74 : vector<8x32xf32>
    %76 = arith.index_cast %45 : i32 to index
    %c0_25 = arith.constant 0 : index
    %77 = vector.load %arg8[%76, %c0_25] : memref<64x32xf32, #tpu.memory_space<vmem>>, vector<8x32xf32>
    tpu.vector_store %arg8[%76, %c0_25], %75 {strides = array<i32>} : memref<64x32xf32, #tpu.memory_space<vmem>>, vector<8x32xf32>,
    %c2_i32 = arith.constant 2 : i32
    %c8_i32_26 = arith.constant 8 : i32
    %78 = arith.muli %c2_i32, %c8_i32_26 : i32
    %79 = tpu.assume_multiple %78, 8 : i32
    %80 = arith.index_cast %79 : i32 to index
    %c0_27 = arith.constant 0 : index
    %81 = vector.load %arg7[%80, %c0_27] : memref<64x128xf32, #tpu.memory_space<vmem>>, vector<8x128xf32>
    %82 = arith.addf %81, %5 : vector<8x128xf32>
    %cst_28 = arith.constant dense<0.000000e+00> : vector<8x128xf32>
    %83 = tpu.matmul %75, %1, %cst_28 {dimension_numbers = #tpu.dot_dimension_numbers<[1], [0], [0], [1], [0, 0, 1, 1], [], []>} : vector<8x32xf32>, vector<32x128xf32>, vector<8x128xf32> -> vector<8x128xf32>
    %84 = arith.addf %82, %83 : vector<8x128xf32>
    %85 = vector.extract_strided_slice %84 {offsets = [0, 0], sizes = [8, 32], strides = [1, 1]} : vector<8x128xf32> to vector<8x32xf32>
    %86 = arith.negf %85 : vector<8x32xf32>
    %87 = math.exp %86 : vector<8x32xf32>
    %cst_29 = arith.constant 1.000000e+00 : f32
    %88 = vector.broadcast %cst_29 : f32 to vector<8x32xf32>
    %89 = arith.addf %88, %87 : vector<8x32xf32>
    %90 = arith.divf %88, %89 : vector<8x32xf32>
    %91 = vector.extract_strided_slice %84 {offsets = [0, 32], sizes = [8, 32], strides = [1, 1]} : vector<8x128xf32> to vector<8x32xf32>
    %92 = arith.negf %91 : vector<8x32xf32>
    %93 = math.exp %92 : vector<8x32xf32>
    %cst_30 = arith.constant 1.000000e+00 : f32
    %94 = vector.broadcast %cst_30 : f32 to vector<8x32xf32>
    %95 = arith.addf %94, %93 : vector<8x32xf32>
    %96 = arith.divf %94, %95 : vector<8x32xf32>
    %97 = vector.extract_strided_slice %84 {offsets = [0, 64], sizes = [8, 32], strides = [1, 1]} : vector<8x128xf32> to vector<8x32xf32>
    %98 = math.tanh %97 : vector<8x32xf32>
    %99 = vector.extract_strided_slice %84 {offsets = [0, 96], sizes = [8, 32], strides = [1, 1]} : vector<8x128xf32> to vector<8x32xf32>
    %100 = arith.negf %99 : vector<8x32xf32>
    %101 = math.exp %100 : vector<8x32xf32>
    %cst_31 = arith.constant 1.000000e+00 : f32
    %102 = vector.broadcast %cst_31 : f32 to vector<8x32xf32>
    %103 = arith.addf %102, %101 : vector<8x32xf32>
    %104 = arith.divf %102, %103 : vector<8x32xf32>
    %105 = arith.mulf %96, %73 : vector<8x32xf32>
    %106 = arith.mulf %90, %98 : vector<8x32xf32>
    %107 = arith.addf %105, %106 : vector<8x32xf32>
    %108 = math.tanh %107 : vector<8x32xf32>
    %109 = arith.mulf %104, %108 : vector<8x32xf32>
    %110 = arith.index_cast %79 : i32 to index
    %c0_32 = arith.constant 0 : index
    %111 = vector.load %arg8[%110, %c0_32] : memref<64x32xf32, #tpu.memory_space<vmem>>, vector<8x32xf32>
    tpu.vector_store %arg8[%110, %c0_32], %109 {strides = array<i32>} : memref<64x32xf32, #tpu.memory_space<vmem>>, vector<8x32xf32>,
    %c3_i32 = arith.constant 3 : i32
    %c8_i32_33 = arith.constant 8 : i32
    %112 = arith.muli %c3_i32, %c8_i32_33 : i32
    %113 = tpu.assume_multiple %112, 8 : i32
    %114 = arith.index_cast %113 : i32 to index
    %c0_34 = arith.constant 0 : index
    %115 = vector.load %arg7[%114, %c0_34] : memref<64x128xf32, #tpu.memory_space<vmem>>, vector<8x128xf32>
    %116 = arith.addf %115, %5 : vector<8x128xf32>
    %cst_35 = arith.constant dense<0.000000e+00> : vector<8x128xf32>
    %117 = tpu.matmul %109, %1, %cst_35 {dimension_numbers = #tpu.dot_dimension_numbers<[1], [0], [0], [1], [0, 0, 1, 1], [], []>} : vector<8x32xf32>, vector<32x128xf32>, vector<8x128xf32> -> vector<8x128xf32>
    %118 = arith.addf %116, %117 : vector<8x128xf32>
    %119 = vector.extract_strided_slice %118 {offsets = [0, 0], sizes = [8, 32], strides = [1, 1]} : vector<8x128xf32> to vector<8x32xf32>
    %120 = arith.negf %119 : vector<8x32xf32>
    %121 = math.exp %120 : vector<8x32xf32>
    %cst_36 = arith.constant 1.000000e+00 : f32
    %122 = vector.broadcast %cst_36 : f32 to vector<8x32xf32>
    %123 = arith.addf %122, %121 : vector<8x32xf32>
    %124 = arith.divf %122, %123 : vector<8x32xf32>
    %125 = vector.extract_strided_slice %118 {offsets = [0, 32], sizes = [8, 32], strides = [1, 1]} : vector<8x128xf32> to vector<8x32xf32>
    %126 = arith.negf %125 : vector<8x32xf32>
    %127 = math.exp %126 : vector<8x32xf32>
    %cst_37 = arith.constant 1.000000e+00 : f32
    %128 = vector.broadcast %cst_37 : f32 to vector<8x32xf32>
    %129 = arith.addf %128, %127 : vector<8x32xf32>
    %130 = arith.divf %128, %129 : vector<8x32xf32>
    %131 = vector.extract_strided_slice %118 {offsets = [0, 64], sizes = [8, 32], strides = [1, 1]} : vector<8x128xf32> to vector<8x32xf32>
    %132 = math.tanh %131 : vector<8x32xf32>
    %133 = vector.extract_strided_slice %118 {offsets = [0, 96], sizes = [8, 32], strides = [1, 1]} : vector<8x128xf32> to vector<8x32xf32>
    %134 = arith.negf %133 : vector<8x32xf32>
    %135 = math.exp %134 : vector<8x32xf32>
    %cst_38 = arith.constant 1.000000e+00 : f32
    %136 = vector.broadcast %cst_38 : f32 to vector<8x32xf32>
    %137 = arith.addf %136, %135 : vector<8x32xf32>
    %138 = arith.divf %136, %137 : vector<8x32xf32>
    %139 = arith.mulf %130, %107 : vector<8x32xf32>
    %140 = arith.mulf %124, %132 : vector<8x32xf32>
    %141 = arith.addf %139, %140 : vector<8x32xf32>
    %142 = math.tanh %141 : vector<8x32xf32>
    %143 = arith.mulf %138, %142 : vector<8x32xf32>
    %144 = arith.index_cast %113 : i32 to index
    %c0_39 = arith.constant 0 : index
    %145 = vector.load %arg8[%144, %c0_39] : memref<64x32xf32, #tpu.memory_space<vmem>>, vector<8x32xf32>
    tpu.vector_store %arg8[%144, %c0_39], %143 {strides = array<i32>} : memref<64x32xf32, #tpu.memory_space<vmem>>, vector<8x32xf32>,
    %c4_i32 = arith.constant 4 : i32
    %c8_i32_40 = arith.constant 8 : i32
    %146 = arith.muli %c4_i32, %c8_i32_40 : i32
    %147 = tpu.assume_multiple %146, 8 : i32
    %148 = arith.index_cast %147 : i32 to index
    %c0_41 = arith.constant 0 : index
    %149 = vector.load %arg7[%148, %c0_41] : memref<64x128xf32, #tpu.memory_space<vmem>>, vector<8x128xf32>
    %150 = arith.addf %149, %5 : vector<8x128xf32>
    %cst_42 = arith.constant dense<0.000000e+00> : vector<8x128xf32>
    %151 = tpu.matmul %143, %1, %cst_42 {dimension_numbers = #tpu.dot_dimension_numbers<[1], [0], [0], [1], [0, 0, 1, 1], [], []>} : vector<8x32xf32>, vector<32x128xf32>, vector<8x128xf32> -> vector<8x128xf32>
    %152 = arith.addf %150, %151 : vector<8x128xf32>
    %153 = vector.extract_strided_slice %152 {offsets = [0, 0], sizes = [8, 32], strides = [1, 1]} : vector<8x128xf32> to vector<8x32xf32>
    %154 = arith.negf %153 : vector<8x32xf32>
    %155 = math.exp %154 : vector<8x32xf32>
    %cst_43 = arith.constant 1.000000e+00 : f32
    %156 = vector.broadcast %cst_43 : f32 to vector<8x32xf32>
    %157 = arith.addf %156, %155 : vector<8x32xf32>
    %158 = arith.divf %156, %157 : vector<8x32xf32>
    %159 = vector.extract_strided_slice %152 {offsets = [0, 32], sizes = [8, 32], strides = [1, 1]} : vector<8x128xf32> to vector<8x32xf32>
    %160 = arith.negf %159 : vector<8x32xf32>
    %161 = math.exp %160 : vector<8x32xf32>
    %cst_44 = arith.constant 1.000000e+00 : f32
    %162 = vector.broadcast %cst_44 : f32 to vector<8x32xf32>
    %163 = arith.addf %162, %161 : vector<8x32xf32>
    %164 = arith.divf %162, %163 : vector<8x32xf32>
    %165 = vector.extract_strided_slice %152 {offsets = [0, 64], sizes = [8, 32], strides = [1, 1]} : vector<8x128xf32> to vector<8x32xf32>
    %166 = math.tanh %165 : vector<8x32xf32>
    %167 = vector.extract_strided_slice %152 {offsets = [0, 96], sizes = [8, 32], strides = [1, 1]} : vector<8x128xf32> to vector<8x32xf32>
    %168 = arith.negf %167 : vector<8x32xf32>
    %169 = math.exp %168 : vector<8x32xf32>
    %cst_45 = arith.constant 1.000000e+00 : f32
    %170 = vector.broadcast %cst_45 : f32 to vector<8x32xf32>
    %171 = arith.addf %170, %169 : vector<8x32xf32>
    %172 = arith.divf %170, %171 : vector<8x32xf32>
    %173 = arith.mulf %164, %141 : vector<8x32xf32>
    %174 = arith.mulf %158, %166 : vector<8x32xf32>
    %175 = arith.addf %173, %174 : vector<8x32xf32>
    %176 = math.tanh %175 : vector<8x32xf32>
    %177 = arith.mulf %172, %176 : vector<8x32xf32>
    %178 = arith.index_cast %147 : i32 to index
    %c0_46 = arith.constant 0 : index
    %179 = vector.load %arg8[%178, %c0_46] : memref<64x32xf32, #tpu.memory_space<vmem>>, vector<8x32xf32>
    tpu.vector_store %arg8[%178, %c0_46], %177 {strides = array<i32>} : memref<64x32xf32, #tpu.memory_space<vmem>>, vector<8x32xf32>,
    %c5_i32 = arith.constant 5 : i32
    %c8_i32_47 = arith.constant 8 : i32
    %180 = arith.muli %c5_i32, %c8_i32_47 : i32
    %181 = tpu.assume_multiple %180, 8 : i32
    %182 = arith.index_cast %181 : i32 to index
    %c0_48 = arith.constant 0 : index
    %183 = vector.load %arg7[%182, %c0_48] : memref<64x128xf32, #tpu.memory_space<vmem>>, vector<8x128xf32>
    %184 = arith.addf %183, %5 : vector<8x128xf32>
    %cst_49 = arith.constant dense<0.000000e+00> : vector<8x128xf32>
    %185 = tpu.matmul %177, %1, %cst_49 {dimension_numbers = #tpu.dot_dimension_numbers<[1], [0], [0], [1], [0, 0, 1, 1], [], []>} : vector<8x32xf32>, vector<32x128xf32>, vector<8x128xf32> -> vector<8x128xf32>
    %186 = arith.addf %184, %185 : vector<8x128xf32>
    %187 = vector.extract_strided_slice %186 {offsets = [0, 0], sizes = [8, 32], strides = [1, 1]} : vector<8x128xf32> to vector<8x32xf32>
    %188 = arith.negf %187 : vector<8x32xf32>
    %189 = math.exp %188 : vector<8x32xf32>
    %cst_50 = arith.constant 1.000000e+00 : f32
    %190 = vector.broadcast %cst_50 : f32 to vector<8x32xf32>
    %191 = arith.addf %190, %189 : vector<8x32xf32>
    %192 = arith.divf %190, %191 : vector<8x32xf32>
    %193 = vector.extract_strided_slice %186 {offsets = [0, 32], sizes = [8, 32], strides = [1, 1]} : vector<8x128xf32> to vector<8x32xf32>
    %194 = arith.negf %193 : vector<8x32xf32>
    %195 = math.exp %194 : vector<8x32xf32>
    %cst_51 = arith.constant 1.000000e+00 : f32
    %196 = vector.broadcast %cst_51 : f32 to vector<8x32xf32>
    %197 = arith.addf %196, %195 : vector<8x32xf32>
    %198 = arith.divf %196, %197 : vector<8x32xf32>
    %199 = vector.extract_strided_slice %186 {offsets = [0, 64], sizes = [8, 32], strides = [1, 1]} : vector<8x128xf32> to vector<8x32xf32>
    %200 = math.tanh %199 : vector<8x32xf32>
    %201 = vector.extract_strided_slice %186 {offsets = [0, 96], sizes = [8, 32], strides = [1, 1]} : vector<8x128xf32> to vector<8x32xf32>
    %202 = arith.negf %201 : vector<8x32xf32>
    %203 = math.exp %202 : vector<8x32xf32>
    %cst_52 = arith.constant 1.000000e+00 : f32
    %204 = vector.broadcast %cst_52 : f32 to vector<8x32xf32>
    %205 = arith.addf %204, %203 : vector<8x32xf32>
    %206 = arith.divf %204, %205 : vector<8x32xf32>
    %207 = arith.mulf %198, %175 : vector<8x32xf32>
    %208 = arith.mulf %192, %200 : vector<8x32xf32>
    %209 = arith.addf %207, %208 : vector<8x32xf32>
    %210 = math.tanh %209 : vector<8x32xf32>
    %211 = arith.mulf %206, %210 : vector<8x32xf32>
    %212 = arith.index_cast %181 : i32 to index
    %c0_53 = arith.constant 0 : index
    %213 = vector.load %arg8[%212, %c0_53] : memref<64x32xf32, #tpu.memory_space<vmem>>, vector<8x32xf32>
    tpu.vector_store %arg8[%212, %c0_53], %211 {strides = array<i32>} : memref<64x32xf32, #tpu.memory_space<vmem>>, vector<8x32xf32>,
    %c6_i32 = arith.constant 6 : i32
    %c8_i32_54 = arith.constant 8 : i32
    %214 = arith.muli %c6_i32, %c8_i32_54 : i32
    %215 = tpu.assume_multiple %214, 8 : i32
    %216 = arith.index_cast %215 : i32 to index
    %c0_55 = arith.constant 0 : index
    %217 = vector.load %arg7[%216, %c0_55] : memref<64x128xf32, #tpu.memory_space<vmem>>, vector<8x128xf32>
    %218 = arith.addf %217, %5 : vector<8x128xf32>
    %cst_56 = arith.constant dense<0.000000e+00> : vector<8x128xf32>
    %219 = tpu.matmul %211, %1, %cst_56 {dimension_numbers = #tpu.dot_dimension_numbers<[1], [0], [0], [1], [0, 0, 1, 1], [], []>} : vector<8x32xf32>, vector<32x128xf32>, vector<8x128xf32> -> vector<8x128xf32>
    %220 = arith.addf %218, %219 : vector<8x128xf32>
    %221 = vector.extract_strided_slice %220 {offsets = [0, 0], sizes = [8, 32], strides = [1, 1]} : vector<8x128xf32> to vector<8x32xf32>
    %222 = arith.negf %221 : vector<8x32xf32>
    %223 = math.exp %222 : vector<8x32xf32>
    %cst_57 = arith.constant 1.000000e+00 : f32
    %224 = vector.broadcast %cst_57 : f32 to vector<8x32xf32>
    %225 = arith.addf %224, %223 : vector<8x32xf32>
    %226 = arith.divf %224, %225 : vector<8x32xf32>
    %227 = vector.extract_strided_slice %220 {offsets = [0, 32], sizes = [8, 32], strides = [1, 1]} : vector<8x128xf32> to vector<8x32xf32>
    %228 = arith.negf %227 : vector<8x32xf32>
    %229 = math.exp %228 : vector<8x32xf32>
    %cst_58 = arith.constant 1.000000e+00 : f32
    %230 = vector.broadcast %cst_58 : f32 to vector<8x32xf32>
    %231 = arith.addf %230, %229 : vector<8x32xf32>
    %232 = arith.divf %230, %231 : vector<8x32xf32>
    %233 = vector.extract_strided_slice %220 {offsets = [0, 64], sizes = [8, 32], strides = [1, 1]} : vector<8x128xf32> to vector<8x32xf32>
    %234 = math.tanh %233 : vector<8x32xf32>
    %235 = vector.extract_strided_slice %220 {offsets = [0, 96], sizes = [8, 32], strides = [1, 1]} : vector<8x128xf32> to vector<8x32xf32>
    %236 = arith.negf %235 : vector<8x32xf32>
    %237 = math.exp %236 : vector<8x32xf32>
    %cst_59 = arith.constant 1.000000e+00 : f32
    %238 = vector.broadcast %cst_59 : f32 to vector<8x32xf32>
    %239 = arith.addf %238, %237 : vector<8x32xf32>
    %240 = arith.divf %238, %239 : vector<8x32xf32>
    %241 = arith.mulf %232, %209 : vector<8x32xf32>
    %242 = arith.mulf %226, %234 : vector<8x32xf32>
    %243 = arith.addf %241, %242 : vector<8x32xf32>
    %244 = math.tanh %243 : vector<8x32xf32>
    %245 = arith.mulf %240, %244 : vector<8x32xf32>
    %246 = arith.index_cast %215 : i32 to index
    %c0_60 = arith.constant 0 : index
    %247 = vector.load %arg8[%246, %c0_60] : memref<64x32xf32, #tpu.memory_space<vmem>>, vector<8x32xf32>
    tpu.vector_store %arg8[%246, %c0_60], %245 {strides = array<i32>} : memref<64x32xf32, #tpu.memory_space<vmem>>, vector<8x32xf32>,
    %c7_i32 = arith.constant 7 : i32
    %c8_i32_61 = arith.constant 8 : i32
    %248 = arith.muli %c7_i32, %c8_i32_61 : i32
    %249 = tpu.assume_multiple %248, 8 : i32
    %250 = arith.index_cast %249 : i32 to index
    %c0_62 = arith.constant 0 : index
    %251 = vector.load %arg7[%250, %c0_62] : memref<64x128xf32, #tpu.memory_space<vmem>>, vector<8x128xf32>
    %252 = arith.addf %251, %5 : vector<8x128xf32>
    %cst_63 = arith.constant dense<0.000000e+00> : vector<8x128xf32>
    %253 = tpu.matmul %245, %1, %cst_63 {dimension_numbers = #tpu.dot_dimension_numbers<[1], [0], [0], [1], [0, 0, 1, 1], [], []>} : vector<8x32xf32>, vector<32x128xf32>, vector<8x128xf32> -> vector<8x128xf32>
    %254 = arith.addf %252, %253 : vector<8x128xf32>
    %255 = vector.extract_strided_slice %254 {offsets = [0, 0], sizes = [8, 32], strides = [1, 1]} : vector<8x128xf32> to vector<8x32xf32>
    %256 = arith.negf %255 : vector<8x32xf32>
    %257 = math.exp %256 : vector<8x32xf32>
    %cst_64 = arith.constant 1.000000e+00 : f32
    %258 = vector.broadcast %cst_64 : f32 to vector<8x32xf32>
    %259 = arith.addf %258, %257 : vector<8x32xf32>
    %260 = arith.divf %258, %259 : vector<8x32xf32>
    %261 = vector.extract_strided_slice %254 {offsets = [0, 32], sizes = [8, 32], strides = [1, 1]} : vector<8x128xf32> to vector<8x32xf32>
    %262 = arith.negf %261 : vector<8x32xf32>
    %263 = math.exp %262 : vector<8x32xf32>
    %cst_65 = arith.constant 1.000000e+00 : f32
    %264 = vector.broadcast %cst_65 : f32 to vector<8x32xf32>
    %265 = arith.addf %264, %263 : vector<8x32xf32>
    %266 = arith.divf %264, %265 : vector<8x32xf32>
    %267 = vector.extract_strided_slice %254 {offsets = [0, 64], sizes = [8, 32], strides = [1, 1]} : vector<8x128xf32> to vector<8x32xf32>
    %268 = math.tanh %267 : vector<8x32xf32>
    %269 = vector.extract_strided_slice %254 {offsets = [0, 96], sizes = [8, 32], strides = [1, 1]} : vector<8x128xf32> to vector<8x32xf32>
    %270 = arith.negf %269 : vector<8x32xf32>
    %271 = math.exp %270 : vector<8x32xf32>
    %cst_66 = arith.constant 1.000000e+00 : f32
    %272 = vector.broadcast %cst_66 : f32 to vector<8x32xf32>
    %273 = arith.addf %272, %271 : vector<8x32xf32>
    %274 = arith.divf %272, %273 : vector<8x32xf32>
    %275 = arith.mulf %266, %243 : vector<8x32xf32>
    %276 = arith.mulf %260, %268 : vector<8x32xf32>
    %277 = arith.addf %275, %276 : vector<8x32xf32>
    %278 = math.tanh %277 : vector<8x32xf32>
    %279 = arith.mulf %274, %278 : vector<8x32xf32>
    %280 = arith.index_cast %249 : i32 to index
    %c0_67 = arith.constant 0 : index
    %281 = vector.load %arg8[%280, %c0_67] : memref<64x32xf32, #tpu.memory_space<vmem>>, vector<8x32xf32>
    tpu.vector_store %arg8[%280, %c0_67], %279 {strides = array<i32>} : memref<64x32xf32, #tpu.memory_space<vmem>>, vector<8x32xf32>,
    %c8_i32_68 = arith.constant 8 : i32
    %c0_69 = arith.constant 0 : index
    %c0_70 = arith.constant 0 : index
    %c0_71 = arith.constant 0 : index
    %282 = vector.load %arg6[%c0_69, %c0_70, %c0_71] : memref<2x8x32xf32, #tpu.memory_space<vmem>>, vector<1x8x32xf32>
    %283 = vector.shape_cast %282 : vector<1x8x32xf32> to vector<8x32xf32>
    %284 = vector.shape_cast %279 : vector<8x32xf32> to vector<1x8x32xf32>
    tpu.vector_store %arg6[%c0_69, %c0_70, %c0_71], %284 {strides = array<i32>} : memref<2x8x32xf32, #tpu.memory_space<vmem>>, vector<1x8x32xf32>,
    %c1_72 = arith.constant 1 : index
    %c0_73 = arith.constant 0 : index
    %c0_74 = arith.constant 0 : index
    %285 = vector.load %arg6[%c1_72, %c0_73, %c0_74] : memref<2x8x32xf32, #tpu.memory_space<vmem>>, vector<1x8x32xf32>
    %286 = vector.shape_cast %285 : vector<1x8x32xf32> to vector<8x32xf32>
    %287 = vector.shape_cast %277 : vector<8x32xf32> to vector<1x8x32xf32>
    tpu.vector_store %arg6[%c1_72, %c0_73, %c0_74], %287 {strides = array<i32>} : memref<2x8x32xf32, #tpu.memory_space<vmem>>, vector<1x8x32xf32>,
    %c0_75 = arith.constant 0 : index
    %c0_76 = arith.constant 0 : index
    %288 = vector.load %arg3[%c0_75, %c0_76] : memref<33x4xf32, #tpu.memory_space<vmem>>, vector<32x4xf32>
    %c32 = arith.constant 32 : index
    %c0_77 = arith.constant 0 : index
    %289 = vector.load %arg3[%c32, %c0_77] : memref<33x4xf32, #tpu.memory_space<vmem>>, vector<1x4xf32>
    %c0_78 = arith.constant 0 : index
    %c0_79 = arith.constant 0 : index
    %290 = vector.load %arg8[%c0_78, %c0_79] : memref<64x32xf32, #tpu.memory_space<vmem>>, vector<64x32xf32>
    %cst_80 = arith.constant dense<0.000000e+00> : vector<64x4xf32>
    %291 = tpu.matmul %290, %288, %cst_80 {dimension_numbers = #tpu.dot_dimension_numbers<[1], [0], [0], [1], [0, 0, 1, 1], [], []>} : vector<64x32xf32>, vector<32x4xf32>, vector<64x4xf32> -> vector<64x4xf32>
    %292 = vector.broadcast %289 : vector<1x4xf32> to vector<64x4xf32>
    %293 = arith.addf %291, %292 : vector<64x4xf32>
    %c0_81 = arith.constant 0 : index
    %c0_82 = arith.constant 0 : index
    %294 = vector.load %arg5[%c0_81, %c0_82] : memref<64x4xf32, #tpu.memory_space<vmem>>, vector<64x4xf32>
    tpu.vector_store %arg5[%c0_81, %c0_82], %293 {strides = array<i32>} : memref<64x4xf32, #tpu.memory_space<vmem>>, vector<64x4xf32>,
    return
  }
}

</mosaic_0001>

<bundles_post_ra>
// kernel: tpu_custom_call.1
= control target key start
LH: loop header
LB: loop body
LE: loop exit
PB: predicated region body
PF: predicated region fallthrough
CT: control target
= control target key end

     0   :  { %vm37_vm0 = vcmask 130048   ;;  %s1866_s0 = inlined_call_operand.vmem [shape: f32[64,16], index: 0, kind: input, shape index: {}]   ;;  %s1867_s1 = inlined_call_operand.vmem [shape: f32[8,128], index: 1, kind: input, shape index: {}]   ;;  %s1868_s2 = inlined_call_operand.vmem [shape: f32[48,128], index: 2, kind: input, shape index: {}]   ;;  %s1869_s3 = inlined_call_operand.vmem [shape: f32[33,4], index: 3, kind: input, shape index: {}]   ;;  %s1870_s4 = inlined_call_operand.vmem [shape: f32[2,8,32], index: 4, kind: input, shape index: {}]   ;;  %s1871_s5 = inlined_call_operand.vmem [shape: f32[64,4], index: 5, kind: output, shape index: {0}]   ;;  %s1872_s6 = inlined_call_operand.hbm [shape: f32[2,8,32], index: 6, kind: output, shape index: {1}]  }
   0x1   :  { %v24_v0 = vld [vmem:[%s1868_s2 + $0x8] sm:$0xff]  ;;  %v23_v1 = vld [vmem:[%s1868_s2] sm:$0xff] }
   0x2   :  { %v33_v2 = vld [vmem:[%s1866_s0 + $0x20] sm:$0xff]  ;;  %1433 = vmatprep.subr.mxu1 %v24_v0  ;;  %1309 = vmatprep.subr.mxu0 %v24_v0  ;;  %v34_v3 = vld [vmem:[%s1866_s0 + $0x28] sm:$0xff] }
   0x3   :  { %1435 = vmatpush3.msra.mxu1 %v24_v0  ;;  %1319 = vmatprep.mubr.msk.f32.mxu1 %vm37_vm0, %v33_v2  ;;  %v1590_v4 = vld [vmem:[%s1868_s2 + $0x28] sm:$0xff]  ;;  %v29_v5 = vld [vmem:[%s1866_s0] sm:$0xff] }
   0x4   :  { %1434 = vmatprep.subr.mxu1 %v23_v1  ;;  %1310 = vmatpush3.msra.mxu0 %v24_v0 }
   0x5   :  { %1436 = vmatpush3.msra.mxu1 %v23_v1  ;;  %1311 = vmatprep.subr.mxu0 %v23_v1 }
   0x6   :  { %12 = vsyncpa [#allocation5], 0  ;;  %1320 = vmatmul.mubr.msk.f32.vlgmr.msra.gmra.mxu1 %vm37_vm0, %v34_v3  ;;  %v1531_v6 = vmov 0.0   ;;  %v30_v7 = vld [vmem:[%s1866_s0 + $0x8] sm:$0xff]  ;;  %v35_v8 = vld [vmem:[%s1866_s0 + $0x30] sm:$0xff]  ;;  %1312 = vmatpush3.msra.mxu0 %v23_v1  ;;  %vm1532_vm1 = vmmov 0  }
   0x7   :  { %1325 = vmatprep.subr.mxu1 %v1531_v6  ;;  %v1607_v9 = vld [vmem:[%s1868_s2 + $0x20] sm:$0xff]  ;;  %1313 = vmatprep.mubr.msk.f32.mxu0 %vm37_vm0, %v29_v5  ;;  %v36_v10 = vld [vmem:[%s1866_s0 + $0x38] sm:$0xff]  ;;  %v1628_v12 = vld [vmem:[%s1868_s2 + $0x10] sm:$0xff]  ;;  %vm181_vm2 = vcmask 261120   ;;  %s1533_s24 = smov 64   ;;  %s1534_s27 = smov 32  }
   0x8   :  { %1326 = vmatpush3.msra.mxu1 %v1590_v4  ;;  %1314 = vmatmul.mubr.msk.f32.vlgmr.msra.gmra.mxu0 %vm37_vm0, %v30_v7  ;;  %v1619_v11 = vld [vmem:[%s1868_s2 + $0x18] sm:$0xff]  ;;  %v176_v13 = vld [vmem:[%s1870_s4] sm:$0xff]  ;;  %v1221_v26 = vld [vmem:[%s1870_s4 + $0x8] sm:$0xff]  ;;  %vm1184_vm3 = vcmask 31744   ;;  %s1535_s26 = smov 96  }
   0x9   :  { %1327 = vmatprep.subr.mxu1 %v1531_v6  ;;  %1322 = vmatprep.mubr.msk.f32.mxu1 %vm37_vm0, %v35_v8  ;;  %v1667_v19 = vld [vmem:[%s1867_s1] sm:$0xff]  ;;  %v31_v55 = vld [vmem:[%s1866_s0 + $0x10] sm:$0xff]  ;;  %v32_v56 = vld [vmem:[%s1866_s0 + $0x18] sm:$0xff]  ;;  %s1536_s1 = smov [#allocation4]  }
   0xa   :  { %1328 = vmatpush3.msra.mxu1 %v1607_v9  ;;  %1347 = vmatprep.subr.mxu0 %v1531_v6  ;;  %s1200_s4 = sshll.u32 %s1536_s1, 4  ;;  %s1201_s4 = int_to_ptr.vmem [resolvable:$true] %s1200_s4 }
   0xb   :  { %1323 = vmatmul.mubr.msk.f32.gmra.mxu1 %vm37_vm0, %v36_v10  ;;  %1329 = vmatprep.subr.mxu1 %v1531_v6  ;;  %p1514_p1 = scmp.lt.s32.totalorder %s1201_s4, %s1201_s4 }
   0xc   :  { %1330 = vmatpush3.msra.mxu1 %v1619_v11  ;;  %1333 = vmatprep.mubr.msk.f32.mxu1 %vm1532_vm1, %v1531_v6 }
   0xd   :  { %1331 = vmatprep.subr.mxu1 %v1531_v6  ;;  %1348 = vmatpush3.msra.mxu0 %v1590_v4 }
   0xe   :  { %1332 = vmatpush3.msra.mxu1 %v1628_v12  ;;  %1349 = vmatprep.subr.mxu0 %v1531_v6 }
   0xf   :  { %1334 = vmatmul.mubr.msk.f32.vlgmr.msra.gmra.mxu1 %vm181_vm2, %v176_v13  ;;  %1336 = vmatprep.subr.mxu1 %v1531_v6 }
  0x10   :  { %1337 = vmatpush3.msra.mxu1 %v1590_v4  ;;  %1344 = vmatprep.mubr.msk.f32.mxu1 %vm1532_vm1, %v1531_v6 }
  0x11   :  { %1338 = vmatprep.subr.mxu1 %v1531_v6  ;;  %1350 = vmatpush3.msra.mxu0 %v1607_v9 }
  0x12   :  { %1339 = vmatpush3.msra.mxu1 %v1607_v9  ;;  %1351 = vmatprep.subr.mxu0 %v1531_v6 }
  0x13   :  { %1340 = vmatprep.subr.mxu1 %v1531_v6  ;;  %1352 = vmatpush3.msra.mxu0 %v1619_v11 }
  0x14   :  { %1341 = vmatpush3.msra.mxu1 %v1619_v11  ;;  %1353 = vmatprep.subr.mxu0 %v1531_v6 }
  0x15   :  { %1342 = vmatprep.subr.mxu1 %v1531_v6  ;;  %1354 = vmatpush3.msra.mxu0 %v1628_v12 }
  0x16   :  { %1343 = vmatpush3.msra.mxu1 %v1628_v12  ;;  %1369 = vmatprep.subr.mxu0 %v1531_v6 }
  0x17   :  { %1358 = vmatprep.subr.mxu1 %v1531_v6  ;;  %1316 = vmatprep.mubr.msk.f32.mxu0 %vm37_vm0, %v31_v55 }
  0x18   :  { %1317 = vmatmul.mubr.msk.f32.gmra.mxu0 %vm37_vm0, %v32_v56 }
  0x19   :  { %1355 = vmatprep.mubr.msk.f32.mxu0 %vm1532_vm1, %v1531_v6 }
  0xc6   :  { %v1658_v14 = vpop.f32.mrf.mxu1 }
  0xc8   :  { %v1660_v15 = vpop.f32.mrf.mxu1  ;;  %v1315_v16 = vpop.f32.mrf.mxu0 }
  0xc9   :  { %v291_v41 = vadd.f32 %v1315_v16, %v1667_v19 }
  0xca   :  { %v128_v18 = vpop.f32.mrf.mxu0 }
  0xcb   :  { %v1662_v17 = vpop.f32.mrf.mxu1  ;;  %v180_v21 = vadd.f32 %v1667_v19, %v128_v18 }
  0xcd   :  { %v1669_v20 = vpop.f32.mrf.mxu1 }
  0xcf   :  { %v251_v22 = vpop.f32.mrf.mxu1 }
  0xd0   :  { %v255_v23 = vadd.f32 %v251_v22, %v180_v21 }
  0xd1   :  { %v1335_v24 = vpop.f32.mrf.mxu1 }
  0xd2   :  { %1445 = vtanh.f32 %v255_v23  ;;  %v1223_v27 = vmul.f32 -1.442695, %v255_v23 }
  0xd4   :  { %1447 = vpow2.f32 %v1223_v27 }
  0xd8   :  { %v1318_v61 = vpop.f32.mrf.mxu0 }
  0xd9   :  { %v503_v27 = vadd.f32 %v1318_v61, %v1667_v19 }
  0xda   :  { %v138_v62 = vpop.f32.mrf.mxu0 }
  0xdb   :  { %v397_v63 = vadd.f32 %v1667_v19, %v138_v62  ;;  %v715_v62 = vadd.f32 %v1658_v14, %v1667_v19 }
  0xdf   :  { %v1446_v25 = vpop.eup %1445 }
  0xe0   :  { %269 = vrot.lane.b32.xlu0 %v1446_v25, %s1533_s24 }
  0xe1   :  { %v1448_v28 = vpop.eup %1447 }
  0xe2   :  { %v259_v29 = vadd.f32 1.0, %v1448_v28 }
  0xe4   :  { %264 = vrot.lane.b32.xlu0 %v1221_v26, %s1534_s27  ;;  %1449 = vrcp.f32 %v259_v29 }
  0xf1   :  { %v1450_v30 = vpop.eup %1449 }
 0x152   :  { %v270_v31 = vpop.permute.xlu0 %269 }
 0x153   :  { %v272_v32 = vmul.f32 %v1450_v30, %v270_v31 }
 0x155   :  { %274 = vrot.lane.b32.xlu1 %v272_v32, %s1534_s27 }
 0x156   :  { %v265_v33 = vpop.permute.xlu0 %264 }
 0x157   :  { %v267_v34 = vmul.f32 %v1450_v30, %v265_v33 }
 0x1c7   :  { %v275_v35 = vpop.permute.xlu1 %274 }
 0x1c8   :  { %v277_v36 = vadd.f32 %v275_v35, %v267_v34 }
 0x1ca   :  { %1451 = vtanh.f32 %v277_v36 }
 0x1d7   :  { %v1452_v37 = vpop.eup %1451 }
 0x1d8   :  { %280 = vrot.lane.b32.xlu1 %v1452_v37, %s1533_s24 }
 0x24a   :  { %v281_v38 = vpop.permute.xlu1 %280 }
 0x24b   :  { %v283_v39 = vmul.f32 %v1450_v30, %v281_v38 }
 0x24d   :  { %285 = vrot.lane.b32.xlu0 %v283_v39, %s1534_s27 }
 0x2bf   :  { %v286_v40 = vpop.permute.xlu0 %285 }
 0x2c0   :  { %288 = vst.msk [vmem:[#allocation3] sm:$0xff] %vm181_vm2, %v286_v40  ;;  %1345 = vmatmul.mubr.msk.f32.vlgmr.msra.gmra.mxu1 %vm181_vm2, %v286_v40 }
 0x2c1   :  { %1359 = vmatpush3.msra.mxu1 %v1590_v4  ;;  %1366 = vmatprep.mubr.msk.f32.mxu1 %vm1532_vm1, %v1531_v6 }
 0x2c2   :  { %1360 = vmatprep.subr.mxu1 %v1531_v6 }
 0x2c3   :  { %1361 = vmatpush3.msra.mxu1 %v1607_v9 }
 0x2c4   :  { %1362 = vmatprep.subr.mxu1 %v1531_v6 }
 0x2c5   :  { %1363 = vmatpush3.msra.mxu1 %v1619_v11 }
 0x2c6   :  { %1364 = vmatprep.subr.mxu1 %v1531_v6 }
 0x2c7   :  { %1365 = vmatpush3.msra.mxu1 %v1628_v12 }
 0x2c8   :  { %1380 = vmatprep.subr.mxu1 %v1531_v6 }
 0x380   :  { %v360_v42 = vpop.f32.mrf.mxu1 }
 0x381   :  { %v364_v43 = vadd.f32 %v360_v42, %v291_v41 }
 0x382   :  { %v1346_v44 = vpop.f32.mrf.mxu1 }
 0x383   :  { %1453 = vtanh.f32 %v364_v43  ;;  %v1225_v46 = vmul.f32 -1.442695, %v364_v43 }
 0x385   :  { %1455 = vpow2.f32 %v1225_v46 }
 0x390   :  { %v1454_v45 = vpop.eup %1453 }
 0x391   :  { %374 = vrot.lane.b32.xlu1 %v1454_v45, %s1533_s24  ;;  %v609_v45 = vadd.f32 %v1667_v19, %v1660_v15 }
 0x392   :  { %v1456_v47 = vpop.eup %1455 }
 0x393   :  { %v368_v48 = vadd.f32 1.0, %v1456_v47 }
 0x395   :  { %1457 = vrcp.f32 %v368_v48 }
 0x3a2   :  { %v1458_v49 = vpop.eup %1457 }
 0x3a3   :  { %v372_v52 = vmul.f32 %v1458_v49, %v277_v36 }
 0x403   :  { %v375_v50 = vpop.permute.xlu1 %374 }
 0x404   :  { %v377_v51 = vmul.f32 %v1458_v49, %v375_v50 }
 0x406   :  { %379 = vrot.lane.b32.xlu0 %v377_v51, %s1534_s27 }
 0x478   :  { %v380_v53 = vpop.permute.xlu0 %379 }
 0x479   :  { %v382_v54 = vadd.f32 %v380_v53, %v372_v52 }
 0x47b   :  { %1459 = vtanh.f32 %v382_v54 }
 0x488   :  { %v1460_v57 = vpop.eup %1459 }
 0x489   :  { %385 = vrot.lane.b32.xlu1 %v1460_v57, %s1533_s24 }
 0x4fb   :  { %v386_v58 = vpop.permute.xlu1 %385 }
 0x4fc   :  { %v388_v59 = vmul.f32 %v1458_v49, %v386_v58 }
 0x4fe   :  { %390 = vrot.lane.b32.xlu0 %v388_v59, %s1534_s27 }
 0x570   :  { %v391_v60 = vpop.permute.xlu0 %390 }
 0x571   :  { %394 = vst.msk [vmem:[#allocation3 + $0x8] sm:$0xff] %vm181_vm2, %v391_v60  ;;  %1356 = vmatmul.mubr.msk.f32.vlgmr.msra.gmra.mxu0 %vm181_vm2, %v391_v60 }
 0x572   :  { %1370 = vmatpush3.msra.mxu0 %v1590_v4  ;;  %1377 = vmatprep.mubr.msk.f32.mxu0 %vm1532_vm1, %v1531_v6 }
 0x573   :  { %1371 = vmatprep.subr.mxu0 %v1531_v6 }
 0x574   :  { %1372 = vmatpush3.msra.mxu0 %v1607_v9 }
 0x575   :  { %1373 = vmatprep.subr.mxu0 %v1531_v6 }
 0x576   :  { %1374 = vmatpush3.msra.mxu0 %v1619_v11 }
 0x577   :  { %1375 = vmatprep.subr.mxu0 %v1531_v6 }
 0x578   :  { %1376 = vmatpush3.msra.mxu0 %v1628_v12 }
 0x579   :  { %1391 = vmatprep.subr.mxu0 %v1531_v6 }
 0x631   :  { %v466_v0 = vpop.f32.mrf.mxu0 }
 0x632   :  { %v470_v1 = vadd.f32 %v466_v0, %v397_v63 }
 0x633   :  { %v1357_v2 = vpop.f32.mrf.mxu0 }
 0x634   :  { %1461 = vtanh.f32 %v470_v1  ;;  %v1227_v5 = vmul.f32 -1.442695, %v470_v1 }
 0x636   :  { %1463 = vpow2.f32 %v1227_v5 }
 0x641   :  { %v1462_v3 = vpop.eup %1461 }
 0x642   :  { %480 = vrot.lane.b32.xlu1 %v1462_v3, %s1533_s24 }
 0x643   :  { %v1464_v7 = vpop.eup %1463 }
 0x644   :  { %v474_v8 = vadd.f32 1.0, %v1464_v7 }
 0x646   :  { %1465 = vrcp.f32 %v474_v8  ;;  %v1041_v8 = vld [vmem:[%s1869_s3 + $0x18] sm:$0xff] }
 0x653   :  { %v1466_v10 = vpop.eup %1465 }
 0x654   :  { %v478_v18 = vmul.f32 %v1466_v10, %v382_v54 }
 0x6b4   :  { %v481_v13 = vpop.permute.xlu1 %480 }
 0x6b5   :  { %v483_v16 = vmul.f32 %v1466_v10, %v481_v13 }
 0x6b7   :  { %485 = vrot.lane.b32.xlu0 %v483_v16, %s1534_s27 }
 0x729   :  { %v486_v21 = vpop.permute.xlu0 %485 }
 0x72a   :  { %v488_v22 = vadd.f32 %v486_v21, %v478_v18  ;;  %v1040_v21 = vld [vmem:[%s1869_s3 + $0x10] sm:$0xff] }
 0x72c   :  { %1467 = vtanh.f32 %v488_v22 }
 0x739   :  { %v1468_v23 = vpop.eup %1467 }
 0x73a   :  { %491 = vrot.lane.b32.xlu1 %v1468_v23, %s1533_s24  ;;  %v1039_v23 = vld [vmem:[%s1869_s3 + $0x8] sm:$0xff] }
 0x7ac   :  { %v492_v24 = vpop.permute.xlu1 %491 }
 0x7ad   :  { %v494_v25 = vmul.f32 %v1466_v10, %v492_v24  ;;  %v1038_v24 = vld [vmem:[%s1869_s3] sm:$0xff] }
 0x7af   :  { %496 = vrot.lane.b32.xlu0 %v494_v25, %s1534_s27  ;;  %v1044_v25 = vld [vmem:[#allocation3 + $0x8] sm:$0xff] }
 0x821   :  { %v497_v26 = vpop.permute.xlu0 %496 }
 0x822   :  { %500 = vst.msk [vmem:[#allocation3 + $0x10] sm:$0xff] %vm181_vm2, %v497_v26  ;;  %1367 = vmatmul.mubr.msk.f32.vlgmr.msra.gmra.mxu1 %vm181_vm2, %v497_v26 }
 0x823   :  { %1381 = vmatpush3.msra.mxu1 %v1590_v4  ;;  %1388 = vmatprep.mubr.msk.f32.mxu1 %vm1532_vm1, %v1531_v6 }
 0x824   :  { %1382 = vmatprep.subr.mxu1 %v1531_v6 }
 0x825   :  { %1383 = vmatpush3.msra.mxu1 %v1607_v9 }
 0x826   :  { %1384 = vmatprep.subr.mxu1 %v1531_v6 }
 0x827   :  { %1385 = vmatpush3.msra.mxu1 %v1619_v11 }
 0x828   :  { %1386 = vmatprep.subr.mxu1 %v1531_v6 }
 0x829   :  { %1387 = vmatpush3.msra.mxu1 %v1628_v12  ;;  %v1045_v26 = vld [vmem:[#allocation3 + $0x10] sm:$0xff] }
 0x82a   :  { %1402 = vmatprep.subr.mxu1 %v1531_v6 }
 0x8e2   :  { %v572_v28 = vpop.f32.mrf.mxu1 }
 0x8e3   :  { %v576_v29 = vadd.f32 %v572_v28, %v503_v27 }
 0x8e4   :  { %v1368_v30 = vpop.f32.mrf.mxu1 }
 0x8e5   :  { %1469 = vtanh.f32 %v576_v29  ;;  %v1229_v32 = vmul.f32 -1.442695, %v576_v29  ;;  %v821_v30 = vadd.f32 %v1667_v19, %v1669_v20 }
 0x8e7   :  { %1471 = vpow2.f32 %v1229_v32 }
 0x8f2   :  { %v1470_v31 = vpop.eup %1469 }
 0x8f3   :  { %586 = vrot.lane.b32.xlu1 %v1470_v31, %s1533_s24 }
 0x8f4   :  { %v1472_v33 = vpop.eup %1471 }
 0x8f5   :  { %v580_v34 = vadd.f32 1.0, %v1472_v33 }
 0x8f7   :  { %1473 = vrcp.f32 %v580_v34  ;;  %v1803_v34 = vld [vmem:[%s1869_s3 + $0x20] ss:$0 sm:$0xff] }
 0x904   :  { %v1474_v35 = vpop.eup %1473 }
 0x905   :  { %v584_v38 = vmul.f32 %v1474_v35, %v488_v22  ;;  %v1043_v22 = vld [vmem:[#allocation3] sm:$0xff] }
 0x965   :  { %v587_v36 = vpop.permute.xlu1 %586 }
 0x966   :  { %v589_v37 = vmul.f32 %v1474_v35, %v587_v36 }
 0x968   :  { %591 = vrot.lane.b32.xlu0 %v589_v37, %s1534_s27 }
 0x9da   :  { %v592_v39 = vpop.permute.xlu0 %591 }
 0x9db   :  { %v594_v40 = vadd.f32 %v592_v39, %v584_v38 }
 0x9dd   :  { %1475 = vtanh.f32 %v594_v40 }
 0x9ea   :  { %v1476_v41 = vpop.eup %1475 }
 0x9eb   :  { %597 = vrot.lane.b32.xlu1 %v1476_v41, %s1533_s24 }
 0xa5d   :  { %v598_v42 = vpop.permute.xlu1 %597 }
 0xa5e   :  { %v600_v43 = vmul.f32 %v1474_v35, %v598_v42 }
 0xa60   :  { %602 = vrot.lane.b32.xlu0 %v600_v43, %s1534_s27 }
 0xad2   :  { %v603_v44 = vpop.permute.xlu0 %602 }
 0xad3   :  { %606 = vst.msk [vmem:[#allocation3 + $0x18] sm:$0xff] %vm181_vm2, %v603_v44  ;;  %1378 = vmatmul.mubr.msk.f32.vlgmr.msra.gmra.mxu0 %vm181_vm2, %v603_v44 }
 0xad4   :  { %1392 = vmatpush3.msra.mxu0 %v1590_v4  ;;  %1399 = vmatprep.mubr.msk.f32.mxu0 %vm1532_vm1, %v1531_v6 }
 0xad5   :  { %1393 = vmatprep.subr.mxu0 %v1531_v6 }
 0xad6   :  { %1394 = vmatpush3.msra.mxu0 %v1607_v9 }
 0xad7   :  { %1395 = vmatprep.subr.mxu0 %v1531_v6 }
 0xad8   :  { %1396 = vmatpush3.msra.mxu0 %v1619_v11 }
 0xad9   :  { %1397 = vmatprep.subr.mxu0 %v1531_v6 }
 0xada   :  { %1398 = vmatpush3.msra.mxu0 %v1628_v12  ;;  %v1046_v27 = vld [vmem:[#allocation3 + $0x18] sm:$0xff] }
 0xadb   :  { %1413 = vmatprep.subr.mxu0 %v1041_v8 }
 0xb93   :  { %v678_v46 = vpop.f32.mrf.mxu0 }
 0xb94   :  { %v682_v47 = vadd.f32 %v678_v46, %v609_v45 }
 0xb95   :  { %v1379_v48 = vpop.f32.mrf.mxu0 }
 0xb96   :  { %1477 = vtanh.f32 %v682_v47  ;;  %v1231_v50 = vmul.f32 -1.442695, %v682_v47 }
 0xb98   :  { %1479 = vpow2.f32 %v1231_v50 }
 0xba3   :  { %v1478_v49 = vpop.eup %1477 }
 0xba4   :  { %692 = vrot.lane.b32.xlu1 %v1478_v49, %s1533_s24 }
 0xba5   :  { %v1480_v51 = vpop.eup %1479 }
 0xba6   :  { %v686_v52 = vadd.f32 1.0, %v1480_v51 }
 0xba8   :  { %1481 = vrcp.f32 %v686_v52 }
 0xbb5   :  { %v1482_v53 = vpop.eup %1481 }
 0xbb6   :  { %v690_v56 = vmul.f32 %v1482_v53, %v594_v40 }
 0xc16   :  { %v693_v54 = vpop.permute.xlu1 %692 }
 0xc17   :  { %v695_v55 = vmul.f32 %v1482_v53, %v693_v54 }
 0xc19   :  { %697 = vrot.lane.b32.xlu0 %v695_v55, %s1534_s27 }
 0xc8b   :  { %v698_v57 = vpop.permute.xlu0 %697 }
 0xc8c   :  { %v700_v15 = vadd.f32 %v698_v57, %v690_v56 }
 0xc8e   :  { %1483 = vtanh.f32 %v700_v15 }
 0xc9b   :  { %v1484_v58 = vpop.eup %1483 }
 0xc9c   :  { %703 = vrot.lane.b32.xlu1 %v1484_v58, %s1533_s24 }
 0xd0e   :  { %v704_v59 = vpop.permute.xlu1 %703 }
 0xd0f   :  { %v706_v60 = vmul.f32 %v1482_v53, %v704_v59 }
 0xd11   :  { %708 = vrot.lane.b32.xlu0 %v706_v60, %s1534_s27  ;;  %v927_v60 = vadd.f32 %v1662_v17, %v1667_v19 }
 0xd83   :  { %v709_v61 = vpop.permute.xlu0 %708 }
 0xd84   :  { %712 = vst.msk [vmem:[#allocation3 + $0x20] sm:$0xff] %vm181_vm2, %v709_v61  ;;  %1389 = vmatmul.mubr.msk.f32.vlgmr.msra.gmra.mxu1 %vm181_vm2, %v709_v61 }
 0xd85   :  { %1403 = vmatpush3.msra.mxu1 %v1590_v4  ;;  %1410 = vmatprep.mubr.msk.f32.mxu1 %vm1532_vm1, %v1531_v6 }
 0xd86   :  { %1404 = vmatprep.subr.mxu1 %v1531_v6 }
 0xd87   :  { %1405 = vmatpush3.msra.mxu1 %v1607_v9 }
 0xd88   :  { %1406 = vmatprep.subr.mxu1 %v1531_v6 }
 0xd89   :  { %1407 = vmatpush3.msra.mxu1 %v1619_v11 }
 0xd8a   :  { %1408 = vmatprep.subr.mxu1 %v1531_v6 }
 0xd8b   :  { %1409 = vmatpush3.msra.mxu1 %v1628_v12  ;;  %v1047_v28 = vld [vmem:[#allocation3 + $0x20] sm:$0xff] }
 0xe44   :  { %v784_v63 = vpop.f32.mrf.mxu1 }
 0xe45   :  { %v788_v4 = vadd.f32 %v784_v63, %v715_v62 }
 0xe46   :  { %v1390_v0 = vpop.f32.mrf.mxu1 }
 0xe47   :  { %1485 = vtanh.f32 %v788_v4  ;;  %v1233_v2 = vmul.f32 -1.442695, %v788_v4 }
 0xe49   :  { %1487 = vpow2.f32 %v1233_v2 }
 0xe54   :  { %v1486_v1 = vpop.eup %1485 }
 0xe55   :  { %798 = vrot.lane.b32.xlu1 %v1486_v1, %s1533_s24 }
 0xe56   :  { %v1488_v9 = vpop.eup %1487 }
 0xe57   :  { %v792_v3 = vadd.f32 1.0, %v1488_v9 }
 0xe59   :  { %1489 = vrcp.f32 %v792_v3 }
 0xe66   :  { %v1490_v11 = vpop.eup %1489 }
 0xe67   :  { %v796_v12 = vmul.f32 %v1490_v11, %v700_v15 }
 0xec7   :  { %v799_v5 = vpop.permute.xlu1 %798 }
 0xec8   :  { %v801_v6 = vmul.f32 %v1490_v11, %v799_v5 }
 0xeca   :  { %803 = vrot.lane.b32.xlu0 %v801_v6, %s1534_s27 }
 0xf3c   :  { %v804_v7 = vpop.permute.xlu0 %803 }
 0xf3d   :  { %v1773_v14 = vadd.f32 %v804_v7, %v796_v12 }
 0xf3f   :  { %1491 = vtanh.f32 %v1773_v14 }
 0xf4c   :  { %v1492_v10 = vpop.eup %1491 }
 0xf4d   :  { %809 = vrot.lane.b32.xlu1 %v1492_v10, %s1533_s24 }
 0xfbf   :  { %v810_v13 = vpop.permute.xlu1 %809 }
 0xfc0   :  { %v812_v16 = vmul.f32 %v1490_v11, %v810_v13 }
 0xfc2   :  { %814 = vrot.lane.b32.xlu0 %v812_v16, %s1534_s27 }
0x1034   :  { %v815_v18 = vpop.permute.xlu0 %814 }
0x1035   :  { %818 = vst.msk [vmem:[#allocation3 + $0x28] sm:$0xff] %vm181_vm2, %v815_v18  ;;  %1400 = vmatmul.mubr.msk.f32.vlgmr.msra.gmra.mxu0 %vm181_vm2, %v815_v18 }
0x1036   :  { %1414 = vmatpush3.msra.mxu0 %v1041_v8  ;;  %1421 = vmatprep.mubr.msk.f32.mxu0 %vm181_vm2, %v1043_v22 }
0x1037   :  { %1415 = vmatprep.subr.mxu0 %v1040_v21 }
0x1038   :  { %1416 = vmatpush3.msra.mxu0 %v1040_v21 }
0x1039   :  { %1417 = vmatprep.subr.mxu0 %v1039_v23 }
0x103a   :  { %1418 = vmatpush3.msra.mxu0 %v1039_v23 }
0x103b   :  { %1419 = vmatprep.subr.mxu0 %v1038_v24 }
0x103c   :  { %1420 = vmatpush3.msra.mxu0 %v1038_v24  ;;  %v1048_v29 = vld [vmem:[#allocation3 + $0x28] sm:$0xff] }
0x103d   :  { %1422 = vmatmul.mubr.msk.f32.vlgmr.msra.gmra.mxu0 %vm181_vm2, %v1044_v25 }
0x103e   :  { %1424 = vmatprep.mubr.msk.f32.mxu0 %vm181_vm2, %v1045_v26 }
0x1041   :  { %1425 = vmatmul.mubr.msk.f32.gmra.mxu0 %vm181_vm2, %v1046_v27 }
0x1042   :  { %1427 = vmatprep.mubr.msk.f32.mxu0 %vm181_vm2, %v1047_v28 }
0x1045   :  { %1428 = vmatmul.mubr.msk.f32.gmra.mxu0 %vm181_vm2, %v1048_v29 }
0x10f5   :  { %v890_v31 = vpop.f32.mrf.mxu0 }
0x10f6   :  { %v894_v32 = vadd.f32 %v890_v31, %v821_v30 }
0x10f7   :  { %v1401_v33 = vpop.f32.mrf.mxu0 }
0x10f8   :  { %1493 = vtanh.f32 %v894_v32  ;;  %v1235_v47 = vmul.f32 -1.442695, %v894_v32 }
0x10fa   :  { %1495 = vpow2.f32 %v1235_v47 }
0x10fd   :  { %v1423_v35 = vpop.f32.mrf.mxu0 }
0x10fe   :  { %v1151_v36 = vadd.f32 %v1423_v35, %v1803_v34 }
0x10ff   :  { %v1145_v37 = vpop.f32.mrf.mxu0 }
0x1100   :  { %1186 = vst.msk [vmem:[%s1871_s5 + $0x8] sm:$0xff] %vm1184_vm3, %v1151_v36  ;;  %v1146_v20 = vadd.f32 %v1803_v34, %v1145_v37 }
0x1101   :  { %v1426_v38 = vpop.f32.mrf.mxu0 }
0x1102   :  { %1185 = vst.msk [vmem:[%s1871_s5] sm:$0xff] %vm1184_vm3, %v1146_v20  ;;  %v1161_v39 = vadd.f32 %v1426_v38, %v1803_v34 }
0x1103   :  { %v1155_v40 = vpop.f32.mrf.mxu0 }
0x1104   :  { %1188 = vst.msk [vmem:[%s1871_s5 + $0x18] sm:$0xff] %vm1184_vm3, %v1161_v39  ;;  %v1156_v41 = vadd.f32 %v1803_v34, %v1155_v40 }
0x1105   :  { %v1494_v42 = vpop.eup %1493  ;;  %v1429_v43 = vpop.f32.mrf.mxu0 }
0x1106   :  { %1187 = vst.msk [vmem:[%s1871_s5 + $0x10] sm:$0xff] %vm1184_vm3, %v1156_v41  ;;  %v1171_v44 = vadd.f32 %v1429_v43, %v1803_v34  ;;  %904 = vrot.lane.b32.xlu1 %v1494_v42, %s1533_s24 }
0x1107   :  { %v1165_v45 = vpop.f32.mrf.mxu0  ;;  %v1496_v48 = vpop.eup %1495 }
0x1108   :  { %1190 = vst.msk [vmem:[%s1871_s5 + $0x28] sm:$0xff] %vm1184_vm3, %v1171_v44  ;;  %v1166_v46 = vadd.f32 %v1803_v34, %v1165_v45  ;;  %v898_v49 = vadd.f32 1.0, %v1496_v48 }
0x110a   :  { %1189 = vst.msk [vmem:[%s1871_s5 + $0x20] sm:$0xff] %vm1184_vm3, %v1166_v46  ;;  %1497 = vrcp.f32 %v898_v49 }
0x1117   :  { %v1498_v50 = vpop.eup %1497 }
0x1118   :  { %v902_v53 = vmul.f32 %v1498_v50, %v1773_v14 }
0x1178   :  { %v905_v51 = vpop.permute.xlu1 %904 }
0x1179   :  { %v907_v52 = vmul.f32 %v1498_v50, %v905_v51 }
0x117b   :  { %909 = vrot.lane.b32.xlu0 %v907_v52, %s1534_s27 }
0x11ed   :  { %v910_v54 = vpop.permute.xlu0 %909 }
0x11ee   :  { %v912_v55 = vadd.f32 %v910_v54, %v902_v53 }
0x11f0   :  { %1499 = vtanh.f32 %v912_v55 }
0x11fd   :  { %v1500_v56 = vpop.eup %1499 }
0x11fe   :  { %915 = vrot.lane.b32.xlu1 %v1500_v56, %s1533_s24 }
0x1270   :  { %v916_v57 = vpop.permute.xlu1 %915 }
0x1271   :  { %v918_v15 = vmul.f32 %v1498_v50, %v916_v57 }
0x1273   :  { %920 = vrot.lane.b32.xlu0 %v918_v15, %s1534_s27 }
0x12e5   :  { %v921_v58 = vpop.permute.xlu0 %920 }
0x12e6   :  { %924 = vst.msk [vmem:[#allocation3 + $0x30] sm:$0xff] %vm181_vm2, %v921_v58  ;;  %1411 = vmatmul.mubr.msk.f32.vlgmr.msra.gmra.mxu1 %vm181_vm2, %v921_v58 }
0x12ed   :  { %v1049_v59 = vld [vmem:[#allocation3 + $0x30] sm:$0xff] }
0x12ee   :  { %1430 = vmatprep.mubr.msk.f32.mxu0 %vm181_vm2, %v1049_v59 }
0x13a6   :  { %v996_v61 = vpop.f32.mrf.mxu1 }
0x13a7   :  { %v1000_v62 = vadd.f32 %v996_v61, %v927_v60 }
0x13a8   :  { %v1412_v63 = vpop.f32.mrf.mxu1 }
0x13a9   :  { %1501 = vtanh.f32 %v1000_v62  ;;  %v1237_v0 = vmul.f32 -1.442695, %v1000_v62 }
0x13ab   :  { %1503 = vpow2.f32 %v1237_v0 }
0x13b6   :  { %v1502_v4 = vpop.eup %1501 }
0x13b7   :  { %1010 = vrot.lane.b32.xlu1 %v1502_v4, %s1533_s24 }
0x13b8   :  { %v1504_v1 = vpop.eup %1503 }
0x13b9   :  { %v1004_v2 = vadd.f32 1.0, %v1504_v1 }
0x13bb   :  { %1505 = vrcp.f32 %v1004_v2 }
0x13c8   :  { %v1506_v9 = vpop.eup %1505 }
0x13c9   :  { %v1008_v5 = vmul.f32 %v1506_v9, %v912_v55 }
0x1429   :  { %v1011_v3 = vpop.permute.xlu1 %1010 }
0x142a   :  { %v1013_v11 = vmul.f32 %v1506_v9, %v1011_v3 }
0x142c   :  { %1015 = vrot.lane.b32.xlu0 %v1013_v11, %s1534_s27 }
0x149e   :  { %v1016_v6 = vpop.permute.xlu0 %1015 }
0x149f   :  { %v1018_v17 = vadd.f32 %v1016_v6, %v1008_v5 }
0x14a1   :  { %1507 = vtanh.f32 %v1018_v17 }
0x14ae   :  { %v1508_v19 = vpop.eup %1507 }
0x14af   :  { %1021 = vrot.lane.b32.xlu1 %v1508_v19, %s1533_s24  ;;  %s1509_s24 = scalar_lea.vmem %s1201_s4, 256 }
0x14b0   :  { %p1510_p0 = scmp.ne.s32.totalorder %s1201_s4, %s1509_s24  ;;  %p1515_p2 = scmp.lt.s32.totalorder %s1509_s24, %s1509_s24 }
0x14b2   :  { %p1516_p3 = por %p1515_p2, %p1514_p1 }
0x14b3   :  { %1033 = vrot.lane.b32.xlu1 %v1018_v17, %s1535_s26 }
0x14b4   :  { %p1517_p4 = pnand %p1516_p3, %p1510_p0 }
0x1521   :  { %v1022_v12 = vpop.permute.xlu1 %1021 }
0x1522   :  { %v1024_v7 = vmul.f32 %v1506_v9, %v1022_v12 }
0x1524   :  { %1026 = vrot.lane.b32.xlu0 %v1024_v7, %s1534_s27 }
0x1525   :  { %v1034_v14 = vpop.permute.xlu1 %1033 }
0x1526   :  { %1037 = vst.msk [vmem:[#allocation4 + $0x8] sm:$0xff] %vm181_vm2, %v1034_v14 }
0x1596   :  { %v1027_v8 = vpop.permute.xlu0 %1026 }
0x1597   :  { %1030 = vst.msk [vmem:[#allocation3 + $0x38] sm:$0xff] %vm181_vm2, %v1027_v8  ;;  %1031 = vst.msk [vmem:[#allocation4] sm:$0xff] %vm181_vm2, %v1027_v8 }
0x159e   :  { %v1050_v10 = vld [vmem:[#allocation3 + $0x38] sm:$0xff] }
0x159f   :  { %1431 = vmatmul.mubr.msk.f32.gmra.mxu0 %vm181_vm2, %v1050_v10 }
0x15a0   :  { %1520 = shalt.err (!%p1517_p4)
}
0x15a1   :  { %s1537_s27 = smov 128   ;;  %s1538_s28 = smov 8  }
0x15a2   :  { %1206 = dma.vmem_to_hbm [thread:$0]  %s1201_s4, 256, %s1872_s6, [#allocation5], %s1537_s27, %s1537_s27, %s1538_s28  }
0x165f   :  { %v1432_v13 = vpop.f32.mrf.mxu0 }
0x1660   :  { %v1181_v16 = vadd.f32 %v1432_v13, %v1803_v34 }
0x1661   :  { %v1175_v18 = vpop.f32.mrf.mxu0 }
0x1662   :  { %1192 = vst.msk [vmem:[%s1871_s5 + $0x38] sm:$0xff] %vm1184_vm3, %v1181_v16  ;;  %v1176_v21 = vadd.f32 %v1803_v34, %v1175_v18 }
0x1664   :  { %1191 = vst.msk [vmem:[%s1871_s5 + $0x30] sm:$0xff] %vm1184_vm3, %v1176_v21 }
0x1665   :  { %1529 = dma.done.wait [#allocation5], 256  }
0x1666   :  { %1530 = vsyncadd [#allocation5], 4294967040 }
0x1667   :  { %1212 = vsyncpa [#allocation5], 1 }

</bundles_post_ra>
